<compile_context>
chip_gen: v6e
topology: v6e:2x2x1
jax: 0.10.0
libtpu: 0.0.40
codegen_flags: <defaults>
</compile_context>

<pallas_src>
import jax
import jax.numpy as jnp
from jax.experimental import pallas as pl
from jax.experimental.pallas import tpu as pltpu

EPS = 1e-5


def _round_up(x, m):
    return ((x + m - 1) // m) * m


def prenorm_linear_kernel(x_ref, gamma_ref, beta_ref, w_ref, b_ref, out_ref):
    # x_ref: (TM, D) row tile of the flattened (B*N, D) activation.
    x = x_ref[...].astype(jnp.float32)

    # --- LayerNorm over last dim; stats in f32 (v5e VPU/EUP have no bf16) ---
    mean = jnp.mean(x, axis=-1, keepdims=True)
    centered = x - mean
    var = jnp.mean(centered * centered, axis=-1, keepdims=True)
    inv_std = jax.lax.rsqrt(var + EPS)
    y = centered * inv_std
    y = y * gamma_ref[...].astype(jnp.float32) + beta_ref[...].astype(jnp.float32)

    # --- fn = Linear(D, D) on the MXU ---
    # Feed the MXU in the weights' dtype (bf16 weights stay bf16 -> native MXU
    # throughput; f32 weights stay f32), accumulate in f32.
    out = jnp.dot(y.astype(w_ref.dtype), w_ref[...],
                  preferred_element_type=jnp.float32)
    out = out + b_ref[...].astype(jnp.float32)

    out_ref[...] = out.astype(out_ref.dtype)


def prenorm_linear(x, gamma, beta, w, b, *, block_rows=256):
    """PreNorm with fn = Linear(D, D):  LayerNorm(x) @ w + b,  x: (B, N, D)."""
    B, N, D = x.shape
    rows = B * N
    x2 = x.reshape(rows, D)  # glue reshape in plain JAX

    # NOTE: for peak lane/MXU utilization D should be a multiple of 128 (real
    # ViT dims 768/1024 are fine). Smaller D still lowers correctly because the
    # block's last dim equals the full array dim, just at reduced utilization.

    # Row tile: multiple of 8 (sublane granularity), 256 by default (full MXU
    # height), capped by the padded row count for small inputs.
    tm = min(block_rows, _round_up(rows, 8))
    tm = _round_up(tm, 8)

    # Pad rows so every grid step sees a full (tm, D) tile: no ragged tail,
    # no masked stores, no OOB. LayerNorm of all-zero pad rows is finite
    # (var + eps > 0); the pad rows are sliced off after the call.
    rows_padded = _round_up(rows, tm)
    if rows_padded != rows:
        x2 = jnp.pad(x2, ((0, rows_padded - rows), (0, 0)))

    grid = (rows_padded // tm,)

    out2 = pl.pallas_call(
        prenorm_linear_kernel,
        out_shape=jax.ShapeDtypeStruct((rows_padded, D), x.dtype),
        grid_spec=pltpu.PrefetchScalarGridSpec(
            num_scalar_prefetch=0,
            grid=grid,
            in_specs=[
                pl.BlockSpec((tm, D), lambda i: (i, 0)),   # x: streamed row tiles
                pl.BlockSpec((1, D), lambda i: (0, 0)),    # gamma: VMEM-resident
                pl.BlockSpec((1, D), lambda i: (0, 0)),    # beta: VMEM-resident
                pl.BlockSpec((D, D), lambda i: (0, 0)),    # w: VMEM-resident
                pl.BlockSpec((1, D), lambda i: (0, 0)),    # bias: VMEM-resident
            ],
            out_specs=pl.BlockSpec((tm, D), lambda i: (i, 0)),
        ),
        compiler_params=pltpu.CompilerParams(
            # Row tiles are independent -> parallel grid axis (lets v7x shard
            # the grid across its two TensorCores; harmless on v5e/v6e).
            dimension_semantics=("parallel",),
        ),
    )(x2, gamma, beta, w, b)

    if rows_padded != rows:
        out2 = out2[:rows]
    return out2.reshape(B, N, D)


if __name__ == "__main__":
    # Small shapes consistent with a ViT token stream: batch=2, seq=8, dim=32.
    B, N, D = 2, 8, 32
    key = jax.random.PRNGKey(0)
    kx, kw, kb = jax.random.split(key, 3)

    x = jax.random.normal(kx, (B, N, D), dtype=jnp.float32)

    # LayerNorm params: PyTorch default init (weight=1, bias=0).
    gamma = jnp.ones((1, D), dtype=jnp.float32)
    beta = jnp.zeros((1, D), dtype=jnp.float32)

    # fn = Linear(D, D): deterministic random init.
    w = jax.random.normal(kw, (D, D), dtype=jnp.float32) / jnp.sqrt(D)
    b = jax.random.normal(kb, (1, D), dtype=jnp.float32) * 0.01

    out = prenorm_linear(x, gamma, beta, w, b)
    out = jax.block_until_ready(out)

    # Pure-JAX reference for correctness.
    mean = jnp.mean(x, axis=-1, keepdims=True)
    var = jnp.mean((x - mean) ** 2, axis=-1, keepdims=True)
    xn = (x - mean) * jax.lax.rsqrt(var + EPS)
    ref = (xn * gamma + beta) @ w + b

    assert out.shape == (B, N, D)
    assert jnp.allclose(out, ref, atol=1e-4, rtol=1e-4), "mismatch vs reference"

    print("KERNEL_OK")
</pallas_src>

<mosaic_0001>
module attributes {stable_mosaic.version = 11 : i64} {
  func.func @prenorm_linear_kernel(%arg0: i32, %arg1: memref<16x32xf32, #tpu.memory_space<vmem>>, %arg2: memref<1x32xf32, #tpu.memory_space<vmem>>, %arg3: memref<1x32xf32, #tpu.memory_space<vmem>>, %arg4: memref<32x32xf32, #tpu.memory_space<vmem>>, %arg5: memref<1x32xf32, #tpu.memory_space<vmem>>, %arg6: memref<16x32xf32, #tpu.memory_space<vmem>>) attributes {dimension_semantics = [#tpu.dimension_semantics<parallel>], iteration_bounds = array<i64: 1>, scalar_prefetch = 0 : i64, scratch_operands = 0 : i64, tpu.core_type = #tpu.core_type<tc>, window_params = [{transform_indices = @transform_0, window_bounds = array<i64: 16, 32>}, {pipeline_mode = #tpu.pipeline_mode<synchronous>, transform_indices = @transform_1, window_bounds = array<i64: 1, 32>}, {pipeline_mode = #tpu.pipeline_mode<synchronous>, transform_indices = @transform_2, window_bounds = array<i64: 1, 32>}, {pipeline_mode = #tpu.pipeline_mode<synchronous>, transform_indices = @transform_3, window_bounds = array<i64: 32, 32>}, {pipeline_mode = #tpu.pipeline_mode<synchronous>, transform_indices = @transform_4, window_bounds = array<i64: 1, 32>}, {transform_indices = @transform_5, window_bounds = array<i64: 16, 32>}]} {
    %c0 = arith.constant 0 : index
    %c0_0 = arith.constant 0 : index
    %0 = vector.load %arg1[%c0, %c0_0] : memref<16x32xf32, #tpu.memory_space<vmem>>, vector<16x32xf32>
    %cst = arith.constant dense<0.000000e+00> : vector<16xf32>
    %1 = vector.multi_reduction <add>, %0, %cst [1] : vector<16x32xf32> to vector<16xf32>
    %2 = vector.shape_cast %1 : vector<16xf32> to vector<16x1xf32>
    %cst_1 = arith.constant 3.200000e+01 : f32
    %3 = vector.broadcast %cst_1 : f32 to vector<16x1xf32>
    %4 = arith.divf %2, %3 : vector<16x1xf32>
    %5 = vector.broadcast %4 : vector<16x1xf32> to vector<16x32xf32>
    %6 = arith.subf %0, %5 : vector<16x32xf32>
    %7 = arith.mulf %6, %6 : vector<16x32xf32>
    %cst_2 = arith.constant dense<0.000000e+00> : vector<16xf32>
    %8 = vector.multi_reduction <add>, %7, %cst_2 [1] : vector<16x32xf32> to vector<16xf32>
    %9 = vector.shape_cast %8 : vector<16xf32> to vector<16x1xf32>
    %cst_3 = arith.constant 3.200000e+01 : f32
    %10 = vector.broadcast %cst_3 : f32 to vector<16x1xf32>
    %11 = arith.divf %9, %10 : vector<16x1xf32>
    %cst_4 = arith.constant 9.99999974E-6 : f32
    %12 = vector.broadcast %cst_4 : f32 to vector<16x1xf32>
    %13 = arith.addf %11, %12 : vector<16x1xf32>
    %14 = math.rsqrt %13 : vector<16x1xf32>
    %15 = vector.broadcast %14 : vector<16x1xf32> to vector<16x32xf32>
    %16 = arith.mulf %6, %15 : vector<16x32xf32>
    %c0_5 = arith.constant 0 : index
    %c0_6 = arith.constant 0 : index
    %17 = vector.load %arg2[%c0_5, %c0_6] : memref<1x32xf32, #tpu.memory_space<vmem>>, vector<1x32xf32>
    %18 = vector.broadcast %17 : vector<1x32xf32> to vector<16x32xf32>
    %19 = arith.mulf %16, %18 : vector<16x32xf32>
    %c0_7 = arith.constant 0 : index
    %c0_8 = arith.constant 0 : index
    %20 = vector.load %arg3[%c0_7, %c0_8] : memref<1x32xf32, #tpu.memory_space<vmem>>, vector<1x32xf32>
    %21 = vector.broadcast %20 : vector<1x32xf32> to vector<16x32xf32>
    %22 = arith.addf %19, %21 : vector<16x32xf32>
    %c0_9 = arith.constant 0 : index
    %c0_10 = arith.constant 0 : index
    %23 = vector.load %arg4[%c0_9, %c0_10] : memref<32x32xf32, #tpu.memory_space<vmem>>, vector<32x32xf32>
    %cst_11 = arith.constant dense<0.000000e+00> : vector<16x32xf32>
    %24 = tpu.matmul %22, %23, %cst_11 {dimension_numbers = #tpu.dot_dimension_numbers<[1], [0], [0], [1], [0, 0, 1, 1], [], []>} : vector<16x32xf32>, vector<32x32xf32>, vector<16x32xf32> -> vector<16x32xf32>
    %c0_12 = arith.constant 0 : index
    %c0_13 = arith.constant 0 : index
    %25 = vector.load %arg5[%c0_12, %c0_13] : memref<1x32xf32, #tpu.memory_space<vmem>>, vector<1x32xf32>
    %26 = vector.broadcast %25 : vector<1x32xf32> to vector<16x32xf32>
    %27 = arith.addf %24, %26 : vector<16x32xf32>
    %c0_14 = arith.constant 0 : index
    %c0_15 = arith.constant 0 : index
    %28 = vector.load %arg6[%c0_14, %c0_15] : memref<16x32xf32, #tpu.memory_space<vmem>>, vector<16x32xf32>
    tpu.vector_store %arg6[%c0_14, %c0_15], %27 {strides = array<i32>} : memref<16x32xf32, #tpu.memory_space<vmem>>, vector<16x32xf32>,
    return
  }
  func.func @transform_0(%arg0: i32) -> (i32, i32) {
    %c0_i32 = arith.constant 0 : i32
    %c0_i32_0 = arith.constant 0 : i32
    return %arg0, %c0_i32 : i32, i32
  }
  func.func @transform_1(%arg0: i32) -> (i32, i32) {
    %c0_i32 = arith.constant 0 : i32
    %c0_i32_0 = arith.constant 0 : i32
    %c0_i32_1 = arith.constant 0 : i32
    return %c0_i32, %c0_i32_0 : i32, i32
  }
  func.func @transform_2(%arg0: i32) -> (i32, i32) {
    %c0_i32 = arith.constant 0 : i32
    %c0_i32_0 = arith.constant 0 : i32
    %c0_i32_1 = arith.constant 0 : i32
    return %c0_i32, %c0_i32_0 : i32, i32
  }
  func.func @transform_3(%arg0: i32) -> (i32, i32) {
    %c0_i32 = arith.constant 0 : i32
    %c0_i32_0 = arith.constant 0 : i32
    %c0_i32_1 = arith.constant 0 : i32
    return %c0_i32, %c0_i32_0 : i32, i32
  }
  func.func @transform_4(%arg0: i32) -> (i32, i32) {
    %c0_i32 = arith.constant 0 : i32
    %c0_i32_0 = arith.constant 0 : i32
    %c0_i32_1 = arith.constant 0 : i32
    return %c0_i32, %c0_i32_0 : i32, i32
  }
  func.func @transform_5(%arg0: i32) -> (i32, i32) {
    %c0_i32 = arith.constant 0 : i32
    %c0_i32_0 = arith.constant 0 : i32
    return %arg0, %c0_i32 : i32, i32
  }
}

</mosaic_0001>

<bundles_post_ra>
// kernel: tpu_custom_call.1
= control target key start
LH: loop header
LB: loop body
LE: loop exit
PB: predicated region body
PF: predicated region fallthrough
CT: control target
= control target key end

     0   :  { %10 = vsyncpa [#allocation3], 0  ;;  %s376_s0 = inlined_call_operand.hbm [shape: f32[16,32], index: 0, kind: input, shape index: {}]   ;;  %s377_s1 = inlined_call_operand.vmem [shape: f32[1,32], index: 1, kind: input, shape index: {}]   ;;  %s378_s2 = inlined_call_operand.vmem [shape: f32[1,32], index: 2, kind: input, shape index: {}]   ;;  %s379_s3 = inlined_call_operand.hbm [shape: f32[32,32], index: 3, kind: input, shape index: {}]   ;;  %s380_s4 = inlined_call_operand.vmem [shape: f32[1,32], index: 4, kind: input, shape index: {}]   ;;  %s381_s5 = inlined_call_operand.hbm [shape: f32[16,32], index: 5, kind: output, shape index: {}]  }
   0x1   :  { %11 = vsyncpa [#allocation6], 0 }
   0x2   :  { %12 = vsyncpa [#allocation4], 0  ;;  %s306_s18 = smov [#allocation2]  }
   0x3   :  { %s18_s19 = sshll.u32 %s306_s18, 4  ;;  %s19_s19 = int_to_ptr.vmem [resolvable:$true] %s18_s19 }
   0x4   :  { %s248_s20 = scalar_lea.vmem %s19_s19, 256  ;;  %p253_p1 = scmp.lt.s32.totalorder %s19_s19, %s19_s19 }
   0x5   :  { %p249_p0 = scmp.ne.s32.totalorder %s19_s19, %s248_s20  ;;  %p254_p2 = scmp.lt.s32.totalorder %s248_s20, %s248_s20 }
   0x7   :  { %p255_p3 = por %p254_p2, %p253_p1 }
   0x9   :  { %p256_p4 = pnand %p255_p3, %p249_p0 }
   0xb   :  { %259 = shalt.err (!%p256_p4)
}
   0xc   :  { %s307_s21 = smov 128   ;;  %s308_s22 = smov 8  }
   0xd   :  { %24 = dma.hbm_to_vmem [thread:$0]  %s376_s0, 256, %s19_s19, [#allocation3], %s307_s21, %s307_s21, %s308_s22  }
   0xe   :  { %s309_s25 = smov [#allocation5]  }
   0xf   :  { %s34_s26 = sshll.u32 %s309_s25, 4  ;;  %s35_s26 = int_to_ptr.vmem [resolvable:$true] %s34_s26 }
  0x10   :  { %s268_s27 = scalar_lea.vmem %s35_s26, 512  ;;  %p273_p6 = scmp.lt.s32.totalorder %s35_s26, %s35_s26 }
  0x11   :  { %p269_p5 = scmp.ne.s32.totalorder %s35_s26, %s268_s27  ;;  %p274_p7 = scmp.lt.s32.totalorder %s268_s27, %s268_s27 }
  0x13   :  { %p275_p8 = por %p274_p7, %p273_p6 }
  0x15   :  { %p276_p9 = pnand %p275_p8, %p269_p5 }
  0x17   :  { %279 = shalt.err (!%p276_p9)
}
  0x18   :  { %40 = dma.hbm_to_vmem [thread:$0]  %s379_s3, 512, %s35_s26, [#allocation6], %s307_s21, %s307_s21, %s308_s22  }
  0x19   :  { %300 = dma.done.wait [#allocation3], 256  }
  0x1a   :  { %301 = vsyncadd [#allocation3], 4294967040 }
  0x1b   :  { %302 = dma.done.wait [#allocation6], 512  }
  0x1c   :  { %303 = vsyncadd [#allocation6], 4294966784  ;;  %vm51_vm0 = vcmask 261120   ;;  %v49_v0 = vld [vmem:[#allocation2] sm:$0xff]  ;;  %v50_v1 = vld [vmem:[#allocation2 + $0x8] sm:$0xff] }
  0x1d   :  { %v52_v2 = vsel %vm51_vm0, %v49_v0, 0.0  ;;  %v55_v3 = vsel %vm51_vm0, %v50_v1, 0.0  ;;  %v100_v14 = vld [vmem:[#allocation5 + $0x18] sm:$0xff]  ;;  %v99_v15 = vld [vmem:[#allocation5 + $0x10] sm:$0xff]  ;;  %v98_v16 = vld [vmem:[#allocation5 + $0x8] sm:$0xff] }
  0x1e   :  { %53 = vadd.xlane.f32.xlu0 %v52_v2  ;;  %220 = vmatprep.subr.mxu0 %v100_v14  ;;  %v97_v17 = vld [vmem:[#allocation5] sm:$0xff]  ;;  %v209_v25 = vld [vmem:[%s377_s1] ss:$0 sm:$0xff]  ;;  %s310_s1 = smov [#allocation7]  }
  0x1f   :  { %221 = vmatpush3.msra.mxu0 %v100_v14  ;;  %v210_v27 = vld [vmem:[%s378_s2] ss:$0 sm:$0xff]  ;;  %s196_s9 = sshll.u32 %s310_s1, 4  ;;  %s197_s9 = int_to_ptr.vmem [resolvable:$true] %s196_s9 }
  0x20   :  { %222 = vmatprep.subr.mxu0 %v99_v15  ;;  %v211_v34 = vld [vmem:[%s380_s4] ss:$0 sm:$0xff]  ;;  %s280_s2 = scalar_lea.vmem %s197_s9, 256  ;;  %p285_p11 = scmp.lt.s32.totalorder %s197_s9, %s197_s9 }
  0x21   :  { %223 = vmatpush3.msra.mxu0 %v99_v15  ;;  %p281_p10 = scmp.ne.s32.totalorder %s197_s9, %s280_s2  ;;  %p286_p12 = scmp.lt.s32.totalorder %s280_s2, %s280_s2 }
  0x22   :  { %56 = vadd.xlane.f32.xlu0 %v55_v3  ;;  %224 = vmatprep.subr.mxu0 %v98_v16 }
  0x23   :  { %225 = vmatpush3.msra.mxu0 %v98_v16  ;;  %p287_p13 = por %p286_p12, %p285_p11 }
  0x24   :  { %226 = vmatprep.subr.mxu0 %v97_v17 }
  0x25   :  { %227 = vmatpush3.msra.mxu0 %v97_v17  ;;  %p288_p0 = pnand %p287_p13, %p281_p10 }
  0xa7   :  { %v54_v4 = vpop.xlane.xlu0 %53 }
  0xa8   :  { %v59_v5 = vmul.f32 0.03125, %v54_v4 }
  0xaa   :  { %v61_v6 = vsub.f32 %v49_v0, %v59_v5 }
  0xab   :  { %v57_v7 = vpop.xlane.xlu0 %56 }
  0xac   :  { %v60_v8 = vmul.f32 0.03125, %v57_v7  ;;  %v63_v9 = vmul.f32 %v61_v6, %v61_v6 }
  0xae   :  { %v62_v10 = vsub.f32 %v50_v1, %v60_v8  ;;  %v65_v11 = vsel %vm51_vm0, %v63_v9, 0.0 }
  0xaf   :  { %66 = vadd.xlane.f32.xlu1 %v65_v11 }
  0xb0   :  { %v64_v12 = vmul.f32 %v62_v10, %v62_v10 }
  0xb2   :  { %v68_v13 = vsel %vm51_vm0, %v64_v12, 0.0 }
  0xb3   :  { %69 = vadd.xlane.f32.xlu1 %v68_v13 }
 0x138   :  { %v67_v18 = vpop.xlane.xlu1 %66 }
 0x139   :  { %v71_v19 = vmul.f32 0.03125, %v67_v18 }
 0x13b   :  { %v73_v20 = vadd.f32 1e-05, %v71_v19 }
 0x13c   :  { %v70_v21 = vpop.xlane.xlu1 %69 }
 0x13d   :  { %236 = vrsqrt.f32 %v73_v20  ;;  %v72_v22 = vmul.f32 0.03125, %v70_v21 }
 0x13f   :  { %v74_v23 = vadd.f32 1e-05, %v72_v22 }
 0x141   :  { %238 = vrsqrt.f32 %v74_v23 }
 0x14a   :  { %v237_v24 = vpop.eup %236 }
 0x14b   :  { %v77_v26 = vmul.f32 %v237_v24, %v61_v6 }
 0x14d   :  { %v86_v28 = vmul.f32 %v209_v25, %v77_v26 }
 0x14e   :  { %v239_v29 = vpop.eup %238 }
 0x14f   :  { %v78_v30 = vmul.f32 %v239_v29, %v62_v10  ;;  %v95_v31 = vadd.f32 %v210_v27, %v86_v28 }
 0x151   :  { %v87_v32 = vmul.f32 %v209_v25, %v78_v30  ;;  %228 = vmatprep.mubr.msk.f32.mxu0 %vm51_vm0, %v95_v31 }
 0x153   :  { %v96_v33 = vadd.f32 %v210_v27, %v87_v32 }
 0x155   :  { %229 = vmatmul.mubr.msk.f32.vlgmr.msra.gmra.mxu0 %vm51_vm0, %v96_v33 }
 0x215   :  { %v230_v35 = vpop.f32.mrf.mxu0 }
 0x216   :  { %v186_v36 = vadd.f32 %v230_v35, %v211_v34 }
 0x217   :  { %v180_v37 = vpop.f32.mrf.mxu0 }
 0x218   :  { %190 = vst.msk [vmem:[#allocation7 + $0x8] sm:$0xff] %vm51_vm0, %v186_v36  ;;  %v181_v38 = vadd.f32 %v211_v34, %v180_v37 }
 0x21a   :  { %189 = vst.msk [vmem:[#allocation7] sm:$0xff] %vm51_vm0, %v181_v38 }
 0x21b   :  { %291 = shalt.err (!%p288_p0)
}
 0x21c   :  { %202 = dma.vmem_to_hbm [thread:$0]  %s197_s9, 256, %s381_s5, [#allocation4], %s307_s21, %s307_s21, %s308_s22  }
 0x21d   :  { %304 = dma.done.wait [#allocation4], 256  }
 0x21e   :  { %305 = vsyncadd [#allocation4], 4294967040 }
 0x21f   :  { %206 = vsyncpa [#allocation3], 1 }
 0x220   :  { %207 = vsyncpa [#allocation6], 1 }
 0x221   :  { %208 = vsyncpa [#allocation4], 1 }

</bundles_post_ra>
